<compile_context>
chip_gen: v5e
topology: v5e:2x2
jax: 0.10.0
libtpu: 0.0.40
codegen_flags: <defaults>
</compile_context>

<pallas_src>
import functools

import jax
import jax.numpy as jnp
from jax.experimental import pallas as pl
from jax.experimental.pallas import tpu as pltpu


def am_softmax_kernel(feat_ref, wT_ref, winv_ref, lab_ref, loss_ref,
                      fbf_ref, m_ref, l_ref, t_ref, p_ref,
                      *, m, s, epsilon, num_classes):
    c_idx = pl.program_id(1)
    nc = pl.num_programs(1)
    btile = feat_ref.shape[0]
    ctile = wT_ref.shape[1]
    NEG = -1e30

    @pl.when(c_idx == 0)
    def _init():
        # Per-batch-tile work, hoisted out of the class loop:
        # normalize features in f32, cache as bf16 MXU operand; reset the
        # online-softmax carries.
        f = feat_ref[...]                                        # (bb, D) f32
        ss = jnp.sum(f * f, axis=1, keepdims=True)
        inv = jax.lax.rsqrt(jnp.maximum(ss, 1e-24))              # 1/max(||f||,1e-12)
        fbf_ref[...] = (f * inv).astype(jnp.bfloat16)
        m_ref[...] = jnp.full_like(m_ref, NEG)
        l_ref[...] = jnp.zeros_like(l_ref)
        t_ref[...] = jnp.zeros_like(t_ref)
        p_ref[...] = jnp.zeros_like(p_ref)

    # Raw dot on the MXU (bf16 in, f32 accumulate); fold weight norm after.
    dot = jnp.dot(fbf_ref[...], wT_ref[...],
                  preferred_element_type=jnp.float32)            # (bb, cc)
    cos = jnp.clip(dot * winv_ref[...], -1.0, 1.0)

    col = jax.lax.broadcasted_iota(jnp.int32, (btile, ctile), 1) + c_idx * ctile
    onehot = (col == lab_ref[...]).astype(jnp.float32)           # (bb, cc)
    valid = col < num_classes                                    # mask padded classes

    logits = s * (cos - m * onehot)
    masked = jnp.where(valid, logits, NEG)

    # Online log-sum-exp over the streamed class tiles.
    m_prev = m_ref[...]
    m_new = jnp.maximum(m_prev, jnp.max(masked, axis=1, keepdims=True))
    alpha = jnp.exp(m_prev - m_new)
    l_ref[...] = alpha * l_ref[...] + jnp.sum(jnp.exp(masked - m_new),
                                              axis=1, keepdims=True)
    m_ref[...] = m_new

    # Label-smoothing terms: sum of real-class logits and the picked logit.
    t_ref[...] += jnp.sum(jnp.where(valid, logits, 0.0), axis=1, keepdims=True)
    p_ref[...] += jnp.sum(logits * onehot, axis=1, keepdims=True)

    @pl.when(c_idx == nc - 1)
    def _finalize():
        lse = m_ref[...] + jnp.log(l_ref[...])                   # (bb, 1)
        # per-row loss = lse - (1-eps)*logit[label] - (eps/K) * sum_c logit[c]
        loss_ref[...] = (lse
                         - (1.0 - epsilon) * p_ref[...]
                         - (epsilon / num_classes) * t_ref[...])


def _round_up(x, n):
    return (x + n - 1) // n * n


def am_softmax_v2(features, labels, weight, *, m=0.35, s=10.0, epsilon=0.1,
                  block_b=128, block_c=512):
    """features: (B, D) f32; labels: (B,) int; weight: (C, D) f32 -> scalar loss."""
    features = features.astype(jnp.float32)
    weight = weight.astype(jnp.float32)
    B, D = features.shape
    C, D2 = weight.shape
    assert D == D2

    bb = _round_up(min(block_b, _round_up(B, 8)), 8)
    cc = _round_up(min(block_c, _round_up(C, 128)), 128)
    B_pad = _round_up(B, bb)
    C_pad = _round_up(C, cc)
    nb, nc = B_pad // bb, C_pad // cc

    # Batch-invariant weight preprocessing (hoisted out of the kernel grid):
    # f32 inverse L2 norms and the weight pre-transposed to (D, C_pad) bf16 so
    # the kernel matmul is (bb, D) @ (D, cc) with the class axis lane-dense.
    w_inv = jax.lax.rsqrt(jnp.maximum(jnp.sum(weight * weight, axis=1), 1e-24))
    w_inv_p = jnp.zeros((1, C_pad), jnp.float32).at[0, :C].set(w_inv)
    w_t = jnp.zeros((D, C_pad), jnp.bfloat16).at[:, :C].set(
        weight.T.astype(jnp.bfloat16))

    feats_p = jnp.zeros((B_pad, D), jnp.float32).at[:B].set(features)
    labs_p = jnp.zeros((B_pad, 1), jnp.int32).at[:B, 0].set(
        labels.astype(jnp.int32))

    kernel = functools.partial(am_softmax_kernel, m=float(m), s=float(s),
                               epsilon=float(epsilon), num_classes=C)

    cost = pl.CostEstimate(
        flops=2 * B_pad * C_pad * D,
        transcendentals=B_pad * C_pad,
        bytes_accessed=(B_pad * D * 4 + D * C_pad * 2 + C_pad * 4
                        + B_pad * 4 + B_pad * 4))

    per_row_loss = pl.pallas_call(
        kernel,
        out_shape=jax.ShapeDtypeStruct((B_pad, 1), jnp.float32),
        grid_spec=pltpu.PrefetchScalarGridSpec(
            num_scalar_prefetch=0,
            grid=(nb, nc),
            in_specs=[
                pl.BlockSpec((bb, D), lambda b, c: (b, 0)),    # features (f32)
                pl.BlockSpec((D, cc), lambda b, c: (0, c)),    # weight.T (bf16)
                pl.BlockSpec((1, cc), lambda b, c: (0, c)),    # 1/||w|| (f32)
                pl.BlockSpec((bb, 1), lambda b, c: (b, 0)),    # labels (int32)
            ],
            out_specs=pl.BlockSpec((bb, 1), lambda b, c: (b, 0)),
            scratch_shapes=[
                pltpu.VMEM((bb, D), jnp.bfloat16),   # normalized bf16 features
                pltpu.VMEM((bb, 1), jnp.float32),    # running max
                pltpu.VMEM((bb, 1), jnp.float32),    # running sum-exp
                pltpu.VMEM((bb, 1), jnp.float32),    # sum of logits (smoothing)
                pltpu.VMEM((bb, 1), jnp.float32),    # picked-label logit
            ]),
        compiler_params=pltpu.CompilerParams(
            dimension_semantics=("parallel", "arbitrary"),
            vmem_limit_bytes=32 * 1024 * 1024),
        cost_estimate=cost,
    )(feats_p, w_t, w_inv_p, labs_p)

    return jnp.sum(per_row_loss[:B, 0]) / B


def _reference(features, labels, weight, *, m=0.35, s=10.0, epsilon=0.1):
    """Pure-JAX f32 reference mirroring the PyTorch module."""
    f = features / jnp.maximum(
        jnp.linalg.norm(features, axis=1, keepdims=True), 1e-12)
    w = weight / jnp.linalg.norm(weight, axis=1, keepdims=True)
    cos = jnp.clip(f @ w.T, -1.0, 1.0)
    onehot = jax.nn.one_hot(labels, weight.shape[0], dtype=jnp.float32)
    logits = s * (cos - m * onehot)
    log_probs = jax.nn.log_softmax(logits, axis=1)
    targets = (1.0 - epsilon) * onehot + epsilon / weight.shape[0]
    return jnp.sum(jnp.mean(-targets * log_probs, axis=0))


if __name__ == "__main__":
    # Small shapes consistent with the module (d and num_classes scaled down);
    # chosen so the grid has 2 batch tiles and 2 class tiles (exercises the
    # online LSE streaming and the padded-class masking: C=200 -> C_pad=256).
    B, D, C = 16, 256, 200
    key = jax.random.PRNGKey(0)
    kf, kw, kl = jax.random.split(key, 3)

    features = jax.random.normal(kf, (B, D), dtype=jnp.float32)
    weight = jax.random.normal(kw, (C, D), dtype=jnp.float32) * 0.05  # nn.Linear weight (C, D)
    labels = jax.random.randint(kl, (B,), 0, C, dtype=jnp.int32)

    loss = am_softmax_v2(features, labels, weight, m=0.35, s=10.0, epsilon=0.1,
                         block_b=8, block_c=128)
    loss = jax.block_until_ready(loss)

    ref = _reference(features, labels, weight, m=0.35, s=10.0, epsilon=0.1)
    # bf16 MXU operands (f32 accumulation) vs. pure-f32 reference -> loose tol.
    assert jnp.allclose(loss, ref, rtol=3e-2, atol=3e-2), (loss, ref)

    print("KERNEL_OK")
</pallas_src>

<mosaic_0001>
module attributes {stable_mosaic.version = 11 : i64} {
  func.func @am_softmax_kernel(%arg0: i32, %arg1: i32, %arg2: memref<8x256xf32, #tpu.memory_space<vmem>>, %arg3: memref<256x128xbf16, #tpu.memory_space<vmem>>, %arg4: memref<1x128xf32, #tpu.memory_space<vmem>>, %arg5: memref<8x1xi32, #tpu.memory_space<vmem>>, %arg6: memref<8x1xf32, #tpu.memory_space<vmem>>, %arg7: memref<8x256xbf16, #tpu.memory_space<vmem>>, %arg8: memref<8x1xf32, #tpu.memory_space<vmem>>, %arg9: memref<8x1xf32, #tpu.memory_space<vmem>>, %arg10: memref<8x1xf32, #tpu.memory_space<vmem>>, %arg11: memref<8x1xf32, #tpu.memory_space<vmem>>) attributes {dimension_semantics = [#tpu.dimension_semantics<parallel>, #tpu.dimension_semantics<arbitrary>], iteration_bounds = array<i64: 2, 2>, scalar_prefetch = 0 : i64, scratch_operands = 5 : i64, tpu.core_type = #tpu.core_type<tc>, window_params = [{transform_indices = @transform_0, window_bounds = array<i64: 8, 256>}, {transform_indices = @transform_1, window_bounds = array<i64: 256, 128>}, {transform_indices = @transform_2, window_bounds = array<i64: 1, 128>}, {transform_indices = @transform_3, window_bounds = array<i64: 8, 1>}, {transform_indices = @transform_4, window_bounds = array<i64: 8, 1>}]} {
    %c0_i32 = arith.constant 0 : i32
    %0 = arith.cmpi eq, %arg1, %c0_i32 : i32
    %1 = arith.extui %0 : i1 to i32
    %c0_i32_0 = arith.constant 0 : i32
    %2 = arith.cmpi ne, %1, %c0_i32_0 : i32
    scf.if %2 {
      %c0_35 = arith.constant 0 : index
      %c0_36 = arith.constant 0 : index
      %63 = vector.load %arg2[%c0_35, %c0_36] : memref<8x256xf32, #tpu.memory_space<vmem>>, vector<8x256xf32>
      %64 = arith.mulf %63, %63 : vector<8x256xf32>
      %cst_37 = arith.constant dense<0.000000e+00> : vector<8xf32>
      %65 = vector.multi_reduction <add>, %64, %cst_37 [1] : vector<8x256xf32> to vector<8xf32>
      %66 = vector.shape_cast %65 : vector<8xf32> to vector<8x1xf32>
      %cst_38 = arith.constant 1.000000e-24 : f32
      %67 = vector.broadcast %cst_38 : f32 to vector<8x1xf32>
      %68 = arith.maximumf %66, %67 : vector<8x1xf32>
      %69 = math.rsqrt %68 : vector<8x1xf32>
      %70 = vector.broadcast %69 : vector<8x1xf32> to vector<8x256xf32>
      %71 = arith.mulf %63, %70 : vector<8x256xf32>
      %72 = arith.truncf %71 : vector<8x256xf32> to vector<8x256xbf16>
      %c0_39 = arith.constant 0 : index
      %c0_40 = arith.constant 0 : index
      %73 = vector.load %arg7[%c0_39, %c0_40] : memref<8x256xbf16, #tpu.memory_space<vmem>>, vector<8x256xbf16>
      tpu.vector_store %arg7[%c0_39, %c0_40], %72 {strides = array<i32>} : memref<8x256xbf16, #tpu.memory_space<vmem>>, vector<8x256xbf16>,
      %cst_41 = arith.constant -1.000000e+30 : f32
      %74 = vector.broadcast %cst_41 : f32 to vector<8x1xf32>
      %c0_42 = arith.constant 0 : index
      %c0_43 = arith.constant 0 : index
      %75 = vector.load %arg8[%c0_42, %c0_43] : memref<8x1xf32, #tpu.memory_space<vmem>>, vector<8x1xf32>
      tpu.vector_store %arg8[%c0_42, %c0_43], %74 {strides = array<i32>} : memref<8x1xf32, #tpu.memory_space<vmem>>, vector<8x1xf32>,
      %cst_44 = arith.constant 0.000000e+00 : f32
      %76 = vector.broadcast %cst_44 : f32 to vector<8x1xf32>
      %c0_45 = arith.constant 0 : index
      %c0_46 = arith.constant 0 : index
      %77 = vector.load %arg9[%c0_45, %c0_46] : memref<8x1xf32, #tpu.memory_space<vmem>>, vector<8x1xf32>
      tpu.vector_store %arg9[%c0_45, %c0_46], %76 {strides = array<i32>} : memref<8x1xf32, #tpu.memory_space<vmem>>, vector<8x1xf32>,
      %cst_47 = arith.constant 0.000000e+00 : f32
      %78 = vector.broadcast %cst_47 : f32 to vector<8x1xf32>
      %c0_48 = arith.constant 0 : index
      %c0_49 = arith.constant 0 : index
      %79 = vector.load %arg10[%c0_48, %c0_49] : memref<8x1xf32, #tpu.memory_space<vmem>>, vector<8x1xf32>
      tpu.vector_store %arg10[%c0_48, %c0_49], %78 {strides = array<i32>} : memref<8x1xf32, #tpu.memory_space<vmem>>, vector<8x1xf32>,
      %cst_50 = arith.constant 0.000000e+00 : f32
      %80 = vector.broadcast %cst_50 : f32 to vector<8x1xf32>
      %c0_51 = arith.constant 0 : index
      %c0_52 = arith.constant 0 : index
      %81 = vector.load %arg11[%c0_51, %c0_52] : memref<8x1xf32, #tpu.memory_space<vmem>>, vector<8x1xf32>
      tpu.vector_store %arg11[%c0_51, %c0_52], %80 {strides = array<i32>} : memref<8x1xf32, #tpu.memory_space<vmem>>, vector<8x1xf32>,
    } else {
    }
    %c0 = arith.constant 0 : index
    %c0_1 = arith.constant 0 : index
    %3 = vector.load %arg7[%c0, %c0_1] : memref<8x256xbf16, #tpu.memory_space<vmem>>, vector<8x256xbf16>
    %c0_2 = arith.constant 0 : index
    %c0_3 = arith.constant 0 : index
    %4 = vector.load %arg3[%c0_2, %c0_3] : memref<256x128xbf16, #tpu.memory_space<vmem>>, vector<256x128xbf16>
    %cst = arith.constant dense<0.000000e+00> : vector<8x128xf32>
    %5 = tpu.matmul %3, %4, %cst {dimension_numbers = #tpu.dot_dimension_numbers<[1], [0], [0], [1], [0, 0, 1, 1], [], []>} : vector<8x256xbf16>, vector<256x128xbf16>, vector<8x128xf32> -> vector<8x128xf32>
    %c0_4 = arith.constant 0 : index
    %c0_5 = arith.constant 0 : index
    %6 = vector.load %arg4[%c0_4, %c0_5] : memref<1x128xf32, #tpu.memory_space<vmem>>, vector<1x128xf32>
    %7 = vector.broadcast %6 : vector<1x128xf32> to vector<8x128xf32>
    %8 = arith.mulf %5, %7 : vector<8x128xf32>
    %cst_6 = arith.constant -1.000000e+00 : f32
    %cst_7 = arith.constant 1.000000e+00 : f32
    %9 = vector.broadcast %cst_6 : f32 to vector<8x128xf32>
    %10 = arith.maximumf %9, %8 : vector<8x128xf32>
    %11 = vector.broadcast %cst_7 : f32 to vector<8x128xf32>
    %12 = arith.minimumf %11, %10 : vector<8x128xf32>
    %13 = tpu.iota {dimensions = array<i32: 1>} : vector<8x128xi32>
    %c128_i32 = arith.constant 128 : i32
    %14 = arith.muli %arg1, %c128_i32 : i32
    %15 = vector.broadcast %14 : i32 to vector<8x128xi32>
    %16 = arith.addi %13, %15 : vector<8x128xi32>
    %c0_8 = arith.constant 0 : index
    %c0_9 = arith.constant 0 : index
    %17 = vector.load %arg5[%c0_8, %c0_9] : memref<8x1xi32, #tpu.memory_space<vmem>>, vector<8x1xi32>
    %18 = vector.broadcast %17 : vector<8x1xi32> to vector<8x128xi32>
    %19 = arith.cmpi eq, %16, %18 : vector<8x128xi32>
    %20 = arith.extui %19 : vector<8x128xi1> to vector<8x128xi32>
    %21 = arith.sitofp %20 : vector<8x128xi32> to vector<8x128xf32>
    %c200_i32 = arith.constant 200 : i32
    %22 = vector.broadcast %c200_i32 : i32 to vector<8x128xi32>
    %23 = arith.cmpi slt, %16, %22 : vector<8x128xi32>
    %cst_10 = arith.constant 3.500000e-01 : f32
    %24 = vector.broadcast %cst_10 : f32 to vector<8x128xf32>
    %25 = arith.mulf %24, %21 : vector<8x128xf32>
    %26 = arith.subf %12, %25 : vector<8x128xf32>
    %cst_11 = arith.constant 1.000000e+01 : f32
    %27 = vector.broadcast %cst_11 : f32 to vector<8x128xf32>
    %28 = arith.mulf %27, %26 : vector<8x128xf32>
    %cst_12 = arith.constant -1.000000e+30 : f32
    %29 = vector.broadcast %cst_12 : f32 to vector<8x128xf32>
    %30 = arith.select %23, %28, %29 : vector<8x128xi1>, vector<8x128xf32>
    %c0_13 = arith.constant 0 : index
    %c0_14 = arith.constant 0 : index
    %31 = vector.load %arg8[%c0_13, %c0_14] : memref<8x1xf32, #tpu.memory_space<vmem>>, vector<8x1xf32>
    %cst_15 = arith.constant dense<0xFF800000> : vector<8xf32>
    %32 = vector.multi_reduction <maximumf>, %30, %cst_15 [1] : vector<8x128xf32> to vector<8xf32>
    %33 = vector.shape_cast %32 : vector<8xf32> to vector<8x1xf32>
    %34 = arith.maximumf %31, %33 : vector<8x1xf32>
    %35 = arith.subf %31, %34 : vector<8x1xf32>
    %36 = math.exp %35 : vector<8x1xf32>
    %c0_16 = arith.constant 0 : index
    %c0_17 = arith.constant 0 : index
    %37 = vector.load %arg9[%c0_16, %c0_17] : memref<8x1xf32, #tpu.memory_space<vmem>>, vector<8x1xf32>
    %38 = arith.mulf %36, %37 : vector<8x1xf32>
    %39 = vector.broadcast %34 : vector<8x1xf32> to vector<8x128xf32>
    %40 = arith.subf %30, %39 : vector<8x128xf32>
    %41 = math.exp %40 : vector<8x128xf32>
    %cst_18 = arith.constant dense<0.000000e+00> : vector<8xf32>
    %42 = vector.multi_reduction <add>, %41, %cst_18 [1] : vector<8x128xf32> to vector<8xf32>
    %43 = vector.shape_cast %42 : vector<8xf32> to vector<8x1xf32>
    %44 = arith.addf %38, %43 : vector<8x1xf32>
    %c0_19 = arith.constant 0 : index
    %c0_20 = arith.constant 0 : index
    %45 = vector.load %arg9[%c0_19, %c0_20] : memref<8x1xf32, #tpu.memory_space<vmem>>, vector<8x1xf32>
    tpu.vector_store %arg9[%c0_19, %c0_20], %44 {strides = array<i32>} : memref<8x1xf32, #tpu.memory_space<vmem>>, vector<8x1xf32>,
    %c0_21 = arith.constant 0 : index
    %c0_22 = arith.constant 0 : index
    %46 = vector.load %arg8[%c0_21, %c0_22] : memref<8x1xf32, #tpu.memory_space<vmem>>, vector<8x1xf32>
    tpu.vector_store %arg8[%c0_21, %c0_22], %34 {strides = array<i32>} : memref<8x1xf32, #tpu.memory_space<vmem>>, vector<8x1xf32>,
    %c0_23 = arith.constant 0 : index
    %c0_24 = arith.constant 0 : index
    %47 = vector.load %arg10[%c0_23, %c0_24] : memref<8x1xf32, #tpu.memory_space<vmem>>, vector<8x1xf32>
    %cst_25 = arith.constant 0.000000e+00 : f32
    %48 = vector.broadcast %cst_25 : f32 to vector<8x128xf32>
    %49 = arith.select %23, %28, %48 : vector<8x128xi1>, vector<8x128xf32>
    %cst_26 = arith.constant dense<0.000000e+00> : vector<8xf32>
    %50 = vector.multi_reduction <add>, %49, %cst_26 [1] : vector<8x128xf32> to vector<8xf32>
    %51 = vector.shape_cast %50 : vector<8xf32> to vector<8x1xf32>
    %52 = arith.addf %47, %51 : vector<8x1xf32>
    %c0_27 = arith.constant 0 : index
    %c0_28 = arith.constant 0 : index
    %53 = vector.load %arg10[%c0_27, %c0_28] : memref<8x1xf32, #tpu.memory_space<vmem>>, vector<8x1xf32>
    tpu.vector_store %arg10[%c0_27, %c0_28], %52 {strides = array<i32>} : memref<8x1xf32, #tpu.memory_space<vmem>>, vector<8x1xf32>,
    %c0_29 = arith.constant 0 : index
    %c0_30 = arith.constant 0 : index
    %54 = vector.load %arg11[%c0_29, %c0_30] : memref<8x1xf32, #tpu.memory_space<vmem>>, vector<8x1xf32>
    %55 = arith.mulf %28, %21 : vector<8x128xf32>
    %cst_31 = arith.constant dense<0.000000e+00> : vector<8xf32>
    %56 = vector.multi_reduction <add>, %55, %cst_31 [1] : vector<8x128xf32> to vector<8xf32>
    %57 = vector.shape_cast %56 : vector<8xf32> to vector<8x1xf32>
    %58 = arith.addf %54, %57 : vector<8x1xf32>
    %c0_32 = arith.constant 0 : index
    %c0_33 = arith.constant 0 : index
    %59 = vector.load %arg11[%c0_32, %c0_33] : memref<8x1xf32, #tpu.memory_space<vmem>>, vector<8x1xf32>
    tpu.vector_store %arg11[%c0_32, %c0_33], %58 {strides = array<i32>} : memref<8x1xf32, #tpu.memory_space<vmem>>, vector<8x1xf32>,
    %c1_i32 = arith.constant 1 : i32
    %60 = arith.cmpi eq, %arg1, %c1_i32 : i32
    %61 = arith.extui %60 : i1 to i32
    %c0_i32_34 = arith.constant 0 : i32
    %62 = arith.cmpi ne, %61, %c0_i32_34 : i32
    scf.if %62 {
      %c0_35 = arith.constant 0 : index
      %c0_36 = arith.constant 0 : index
      %63 = vector.load %arg8[%c0_35, %c0_36] : memref<8x1xf32, #tpu.memory_space<vmem>>, vector<8x1xf32>
      %c0_37 = arith.constant 0 : index
      %c0_38 = arith.constant 0 : index
      %64 = vector.load %arg9[%c0_37, %c0_38] : memref<8x1xf32, #tpu.memory_space<vmem>>, vector<8x1xf32>
      %65 = math.log %64 : vector<8x1xf32>
      %66 = arith.addf %63, %65 : vector<8x1xf32>
      %c0_39 = arith.constant 0 : index
      %c0_40 = arith.constant 0 : index
      %67 = vector.load %arg11[%c0_39, %c0_40] : memref<8x1xf32, #tpu.memory_space<vmem>>, vector<8x1xf32>
      %cst_41 = arith.constant 0.899999976 : f32
      %68 = vector.broadcast %cst_41 : f32 to vector<8x1xf32>
      %69 = arith.mulf %68, %67 : vector<8x1xf32>
      %70 = arith.subf %66, %69 : vector<8x1xf32>
      %c0_42 = arith.constant 0 : index
      %c0_43 = arith.constant 0 : index
      %71 = vector.load %arg10[%c0_42, %c0_43] : memref<8x1xf32, #tpu.memory_space<vmem>>, vector<8x1xf32>
      %cst_44 = arith.constant 5.000000e-04 : f32
      %72 = vector.broadcast %cst_44 : f32 to vector<8x1xf32>
      %73 = arith.mulf %72, %71 : vector<8x1xf32>
      %74 = arith.subf %70, %73 : vector<8x1xf32>
      %c0_45 = arith.constant 0 : index
      %c0_46 = arith.constant 0 : index
      %75 = vector.load %arg6[%c0_45, %c0_46] : memref<8x1xf32, #tpu.memory_space<vmem>>, vector<8x1xf32>
      tpu.vector_store %arg6[%c0_45, %c0_46], %74 {strides = array<i32>} : memref<8x1xf32, #tpu.memory_space<vmem>>, vector<8x1xf32>,
    } else {
    }
    return
  }
  func.func @transform_0(%arg0: i32, %arg1: i32) -> (i32, i32) {
    %c0_i32 = arith.constant 0 : i32
    %c0_i32_0 = arith.constant 0 : i32
    return %arg0, %c0_i32 : i32, i32
  }
  func.func @transform_1(%arg0: i32, %arg1: i32) -> (i32, i32) {
    %c0_i32 = arith.constant 0 : i32
    %c0_i32_0 = arith.constant 0 : i32
    return %c0_i32, %arg1 : i32, i32
  }
  func.func @transform_2(%arg0: i32, %arg1: i32) -> (i32, i32) {
    %c0_i32 = arith.constant 0 : i32
    %c0_i32_0 = arith.constant 0 : i32
    return %c0_i32, %arg1 : i32, i32
  }
  func.func @transform_3(%arg0: i32, %arg1: i32) -> (i32, i32) {
    %c0_i32 = arith.constant 0 : i32
    %c0_i32_0 = arith.constant 0 : i32
    return %arg0, %c0_i32 : i32, i32
  }
  func.func @transform_4(%arg0: i32, %arg1: i32) -> (i32, i32) {
    %c0_i32 = arith.constant 0 : i32
    %c0_i32_0 = arith.constant 0 : i32
    return %arg0, %c0_i32 : i32, i32
  }
}

</mosaic_0001>

<bundles_post_ra>
// kernel: tpu_custom_call.1
= control target key start
LH: loop header
LB: loop body
LE: loop exit
PB: predicated region body
PF: predicated region fallthrough
CT: control target
= control target key end

     0   :  { %s1330_s0 = inlined_call_operand.hbm [shape: f32[16,256], index: 0, kind: input, shape index: {}]   ;;  %s1331_s1 = inlined_call_operand.hbm [shape: bf16[256,256], index: 1, kind: input, shape index: {}]   ;;  %s1332_s2 = inlined_call_operand.vmem [shape: f32[1,256], index: 2, kind: input, shape index: {}]   ;;  %s1333_s3 = inlined_call_operand.vmem [shape: s32[16,1], index: 3, kind: input, shape index: {}]   ;;  %s1334_s4 = inlined_call_operand.vmem [shape: f32[16,1], index: 4, kind: output, shape index: {}]  }
   0x1   :  { %1339 = sst [smem:[#allocation18_spill]] %s1330_s0 }
   0x2   :  { %9 = vsyncpa [#allocation8], 0 }
   0x3   :  { %11 = vsyncpa [#allocation8 + $0x1], 0 }
   0x4   :  { %12 = vsyncpa [#allocation10], 0 }
   0x5   :  { %14 = vsyncpa [#allocation10 + $0x1], 0  ;;  %s1096_s15 = smov 0   ;;  %s1098_s16 = smov 0  }
   0x6   :  { %s1100_s17 = smov 0   ;;  %s1102_s18 = smov 0  }
   0x7   :  { %s1104_s19 = smov 0   ;;  %s1106_s20 = smov 0  }
   0x8   :  { %s1108_s21 = smov 0   ;;  %s1110_s22 = smov 0  }
   0x9   :  { %s1112_s23 = smov 0   ;;  %s1114_s24 = smov 0  }
   0xa   :  { %s1116_s25 = smov 0  }
   0xb LB: > { %1340 = sst [smem:[#allocation13_spill]] %s1042_s20  ;;  %s688_s26 = sadd.s32 4294967295, %s1062_s25   ;;  %s1062_s25 = sphi %s1116_s25, %s20_s25   ;;  %s1058_s24 = sphi %s1114_s24, %s1357_s24   ;;  %s1054_s23 = sphi %s1112_s23, %s1364_s23   ;;  %s1050_s22 = sphi %s1110_s22, %s1355_s22   ;;  %s1046_s21 = sphi %s1108_s21, %s1363_s21   ;;  %s1042_s20 = sphi %s1106_s20, %s1354_s20   ;;  %s1038_s19 = sphi %s1104_s19, %s1362_s19   ;;  %s1034_s18 = sphi %s1102_s18, %s1361_s18   ;;  %s1030_s17 = sphi %s1100_s17, %s1360_s17   ;;  %s1026_s16 = sphi %s1098_s16, %s1359_s16   ;;  %s1022_s15 = sphi %s1096_s15, %s1358_s15  }
   0xc   : > { %1341 = sst [smem:[#allocation14_spill]] %s1058_s24  ;;  %s29_s27 = sadd.s32 1, %s1054_s23 }
   0xd   : > { %p30_p0 = scmp.ge.s32.totalorder %s29_s27, 2  ;;  %s32_s28 = sadd.s32 1, %s1058_s24 }
   0xe   : > { %s39_s29 = sadd.s32 1, %s1042_s20  ;;  %p46_p1 = scmp.ne.s32.totalorder %s1042_s20, %s1038_s19 }
   0xf   : > { %s1366_s27 = smov (%p30_p0, %s29_s27), 0  ;;  %s1368_s28 = smov (!%p30_p0, %s32_s28), %s1058_s24 }
  0x10   : > { %1342 = sst [smem:[#allocation15_spill]] %s1366_s27  ;;  %p47_p2 = scmp.eq.s32.totalorder %s1062_s25, 0 }
  0x11   : > { %p52_p3 = scmp.ne.s32.totalorder %s1038_s19, %s1034_s18  ;;  %p34_p4 = scmp.ge.s32.totalorder %s1368_s28, 2 }
  0x12   : > { %p1160_p5 = scmp.eq.s32.totalorder %s688_s26, 0  ;;  %p1166_p6 = por %p47_p2, %p46_p1 }
  0x13   : > { %s62_s6 = ssub.s32 %s1054_s23, %s1366_s27  ;;  %s1370_s28 = smov (%p34_p4, %s1368_s28), 0 }
  0x14   : > { %1345 = sst [smem:[#allocation16_spill]] %s1370_s28  ;;  %p1176_p7 = por %p1160_p5, %p52_p3 }
  0x15   : > { %p63_p8 = scmp.eq.s32.totalorder %s62_s6, 0  ;;  %s36_s8 = ssub.s32 %s1058_s24, %s1370_s28 }
  0x16   : > { %s65_s9 = sadd.s32 1, %s1030_s17  ;;  %p37_p9 = scmp.eq.s32.totalorder %s36_s8, 0 }
  0x17   : > { %p72_p10 = scmp.ne.s32.totalorder %s1030_s17, %s1026_s16  ;;  %p78_p12 = scmp.ne.s32.totalorder %s1026_s16, %s1022_s15 }
  0x18   : > { %s1186_s10 = scalar_select %p63_p8, %s1030_s17, %s65_s9  }
  0x19   : > { %s1189_s11 = scalar_select %p37_p9, %s1042_s20, %s39_s29  }
  0x1a   : > { %p1193_p11 = por %p72_p10, %p47_p2  ;;  %p801_p13 = scmp.lt.s32.totalorder %s1062_s25, 4 }
  0x1b   : > { %1347 = sst [smem:[#allocation17_spill]] %s1189_s11  ;;  %p1202_p0 = por %p78_p12, %p1160_p5 }
  0x1c   : > { %s180_s14 = sand.u32 1, %s1042_s20   ;;  %s773_s26 = sshll.u32 %s1058_s24, 4 }
  0x1d   : > { %s692_s18 = sshll.u32 %s180_s14, 4  ;;  %s1350_s0 = sld [smem:[#allocation18_spill]] }
  0x1e   : > { %s184_s9 = scalar_lea.vmem [#allocation7], %s692_s18  ;;  %p795_p1 = pnand %p801_p13, %p1166_p6 }
  0x1f   : > { %s193_s28 = sshll.u32 %s184_s9, 4  ;;  %p1215_p2 = pnand %p801_p13, %p1193_p11  ;;  %s194_s28 = int_to_ptr.vmem [resolvable:$true] %s193_s28 }
  0x20   : > { %p697_p3 = scmp.ge.s32.totalorder %s1062_s25, 1  ;;  %p232_p4 = scmp.lt.s32.totalorder %s1062_s25, 5 }
  0x21   : > { %s181_s30 = scalar_lea.sflag [#allocation8], %s180_s14  ;;  %s200_s18 = sand.u32 1, %s1030_s17  }
  0x22   : > { %p1221_p5 = pnand %p697_p3, %p232_p4  ;;  %s695_s6 = sshll.u32 %s200_s18, 7 }
  0x23   : > { %s189_s8 = scalar_lea.hbm %s1350_s0, %s773_s26  ;;  %s696_s26 = sshll.u32 %s1054_s23, 2 }
  0x24   : > { %s191_s27 = sshll.u32 %s189_s8, 4  ;;  %s208_s12 = scalar_lea.hbm %s1331_s1, %s696_s26  ;;  %s192_s27 = int_to_ptr.hbm [resolvable:$true] %s191_s27 }
  0x25   : > { %797 = dma.hbm_to_vmem [thread:$0]  (!%p795_p1), %s192_s27, 256, %s194_s28, %s181_s30  }
  0x26   : > { %s209_s9 = sshll.u32 %s208_s12, 4  ;;  %s204_s0 = scalar_lea.vmem [#allocation9], %s695_s6  ;;  %s210_s9 = int_to_ptr.hbm [resolvable:$true] %s209_s9 }
  0x27   : > { %s211_s24 = sshll.u32 %s204_s0, 4  ;;  %s201_s11 = scalar_lea.sflag [#allocation10], %s200_s18  ;;  %s212_s24 = int_to_ptr.vmem [resolvable:$true] %s211_s24 }
  0x28   : > { %s1064_s14 = smov 128   ;;  %s1065_s20 = smov 64  }
  0x29   : > { %s1066_s27 = smov 4   ;;  %236 = sbr.rel (%p1221_p5) target bundleno = 761 (0x2f9), region = 36 }
  0x2a   : > { %800 = dma.hbm_to_vmem [thread:$0]  (!%p1215_p2), %s210_s9, 2048, %s212_s24, %s201_s11, %s1064_s14, %s1065_s20, %s1066_s27  }
  0x2b   : > { %s238_s28 = sand.u32 (!%p1221_p5), 1, %s1038_s19  }
  0x2c   : > { %s698_s30 = sshll.u32 (!%p1221_p5), %s238_s28, 4  ;;  %s239_s8 = scalar_lea.sflag (!%p1221_p5), [#allocation8], %s238_s28 }
  0x2d   : > { %s242_s26 = scalar_lea.vmem (!%p1221_p5), [#allocation7], %s698_s30 }
  0x2e   : > { %1013 = dma.done.wait (%p1176_p7), %s239_s8, 256  }
  0x2f   : > { %1015 = vsyncadd (%p1176_p7), %s239_s8, 4294967040  ;;  %s248_s0 = sand.u32 1, %s1026_s16  }
  0x30   : > { %s699_s18 = sshll.u32 %s248_s0, 7  ;;  %s249_s15 = scalar_lea.sflag [#allocation10], %s248_s0 }
  0x31   : > { %s1240_s20 = scalar_lea.vmem [#allocation9], %s699_s18 }
  0x32   : > { %1017 = dma.done.wait (%p1202_p0), %s249_s15, 2048  }
  0x33   : > { %1019 = vsyncadd (%p1202_p0), %s249_s15, 4294965248  ;;  %p289_p6 = scmp.lt.s32.totalorder %s1046_s21, 1  ;;  %p292_p8 = scmp.lt.s32.totalorder %s1050_s22, 1 }
  0x34   : > { %p702_p7 = scmp.ne.s32.totalorder %s1046_s21, 0 }
  0x35   : > { %s1249_s24 = scalar_select %p289_p6, %s1046_s21, 1 }
  0x36   : > { %s1372_s22 = smov (!%p292_p8, %s1050_s22), 1  ;;  %303 = sbr.rel (%p702_p7) target bundleno = 205 (0xcd), region = 48 }
  0x37   : > { %s291_s29 = scalar_lea.vmem %s1332_s2, %s1249_s24  ;;  %s700_s6 = sshll.u32 %s1372_s22, 3 }
  0x38   : > { %s1259_s13 = scalar_lea.vmem %s1333_s3, %s700_s6  ;;  %s1264_s27 = scalar_lea.vmem %s1334_s4, %s700_s6 }
  0x3b   : > { %v304_v0 = vld [vmem:[%s242_s26] sm:$0xff]  ;;  %v305_v1 = vld [vmem:[%s242_s26 + $0x8] sm:$0xff]  ;;  %vm326_vm0 = vcmask 7168   ;;  %v1067_v5 = vmov -1e+30   ;;  %v1068_v6 = vmov 0.0  }
  0x3c   : > { %v306_v2 = vmul.f32 %v304_v0, %v304_v0  ;;  %v307_v3 = vmul.f32 %v305_v1, %v305_v1  ;;  %327 = vst.msk [vmem:[#allocation3] sm:$0xff] %vm326_vm0, %v1067_v5 }
  0x3d   : > { %328 = vst.msk [vmem:[#allocation4] sm:$0xff] %vm326_vm0, %v1068_v6 }
  0x3e   : > { %v308_v4 = vadd.f32 %v307_v3, %v306_v2  ;;  %329 = vst.msk [vmem:[#allocation5] sm:$0xff] %vm326_vm0, %v1068_v6 }
  0x3f   : > { %330 = vst.msk [vmem:[#allocation6] sm:$0xff] %vm326_vm0, %v1068_v6 }
  0x40   : > { %309 = vadd.xlane.f32.xlu0 %v308_v4 }
  0xb3   : > { %v310_v7 = vpop.xlane.xlu0 %309 }
  0xb4   : > { %v311_v8 = vmax.f32 %v310_v7, 1e-24 }
  0xb6   : > { %897 = vrsqrt.f32 %v311_v8  ;;  %vm318_vm2 = vweird.f32 %v311_v8 }
  0xbc   : > { %v898_v9 = vpop.eup %897 }
  0xbd   : > { %v313_v10 = vmul.f32 %v898_v9, %v311_v8  ;;  %vm319_vm1 = vweird.f32 %v898_v9 }
  0xbe   : > { %vm320_vm3 = vmor %vm318_vm2, %vm319_vm1 }
  0xbf   : > { %v314_v11 = vmul.f32 %v898_v9, %v313_v10 }
  0xc1   : > { %v315_v12 = vmul.f32 0.5, %v314_v11 }
  0xc3   : > { %v316_v13 = vsub.f32 1.5, %v315_v12 }
  0xc5   : > { %v317_v14 = vmul.f32 %v898_v9, %v316_v13 }
  0xc7   : > { %v321_v15 = vsel %vm320_vm3, %v898_v9, %v317_v14 }
  0xc8   : > { %v322_v16 = vmul.f32 %v321_v15, %v304_v0  ;;  %v323_v17 = vmul.f32 %v321_v15, %v305_v1 }
  0xca   : > { %v324_v18 = vpack.c.bf16 %v323_v17, %v322_v16 }
  0xcc   : > { %325 = vst [vmem:[#allocation2] sm:$0xff] %v324_v18 }
  0xcd PF: > { %v781_v19 = vld [vmem:[%s1240_s20 + $0x38] sm:$0xff]  ;;  %v780_v21 = vld [vmem:[%s1240_s20 + $0x30] sm:$0xff]  ;;  %v1069_v23 = vmov 0   ;;  %v779_v25 = vld [vmem:[%s1240_s20 + $0x28] sm:$0xff]  ;;  %v500_v42 = vlaneseq  ;;  %s768_s22 = sshll.u32 %s1046_s21, 7  ;;  %v1070_v50 = vmov 0.0  }
  0xce   : > { %v789_v20 = vld [vmem:[%s1240_s20 + $0x78] sm:$0xff]  ;;  %467 = vmatpush.bf16.msra.mxu0 %v781_v19  ;;  %v788_v22 = vld [vmem:[%s1240_s20 + $0x70] sm:$0xff]  ;;  %899 = vset.pattern.permute.xlu0 %v1069_v23  ;;  %v787_v26 = vld [vmem:[%s1240_s20 + $0x68] sm:$0xff]  ;;  %v503_v44 = vstv %s768_s22  ;;  %vm537_vm6 = vcmask 7168   ;;  %p770_p9 = scmp.ne.s32.totalorder %s1046_s21, 1 }
  0xcf   : > { %480 = vmatpush.bf16.msra.mxu1 %v789_v20  ;;  %900 = vset.pattern.permute.xlu1 %v1069_v23  ;;  %v505_v24 = vld [vmem:[%s1259_s13] sm:$0xff]  ;;  %v778_v27 = vld [vmem:[%s1240_s20 + $0x20] sm:$0xff]  ;;  %v776_v31 = vld [vmem:[%s1240_s20 + $0x10] sm:$0xff]  ;;  %v501_v43 = vand.u32 127, %v500_v42 }
  0xd0   : > { %507 = vperm.xlu0 %899, %v505_v24   ;;  %v786_v28 = vld [vmem:[%s1240_s20 + $0x60] sm:$0xff]  ;;  %v777_v29 = vld [vmem:[%s1240_s20 + $0x18] sm:$0xff]  ;;  %v784_v32 = vld [vmem:[%s1240_s20 + $0x50] sm:$0xff] }
  0xd1   : > { %v785_v30 = vld [vmem:[%s1240_s20 + $0x58] sm:$0xff]  ;;  %v775_v33 = vld [vmem:[%s1240_s20 + $0x8] sm:$0xff]  ;;  %v774_v38 = vld [vmem:[%s1240_s20] sm:$0xff]  ;;  %v504_v45 = vadd.s32 %v503_v44, %v501_v43 }
  0xd2   : > { %468 = vmatpush.bf16.msra.mxu0 %v780_v21  ;;  %v783_v34 = vld [vmem:[%s1240_s20 + $0x48] sm:$0xff]  ;;  %v782_v39 = vld [vmem:[%s1240_s20 + $0x40] sm:$0xff]  ;;  %v901_v47 = vld [vmem:[%s291_s29] ss:$0 sm:$0xff] }
  0xd3   : > { %481 = vmatpush.bf16.msra.mxu1 %v788_v22  ;;  %v331_v35 = vld [vmem:[#allocation2] sm:$0xff]  ;;  %vm512_vm5 = vcmp.lt.s32.totalorder %v504_v45, 200  ;;  %v540_v63 = vld [vmem:[#allocation5] sm:$0xff]  ;;  %v517_v0 = vld [vmem:[#allocation3] sm:$0xff] }
  0xd4   : > { %v365_v36 = vunpack.c.l.b16 %v331_v35  ;;  %v366_v37 = vunpack.c.h.b16 %v331_v35  ;;  %v546_v6 = vld [vmem:[#allocation6] sm:$0xff]  ;;  %v524_v15 = vld [vmem:[#allocation4] sm:$0xff] }
  0xd6   : > { %469 = vmatpush.bf16.msra.mxu0 %v779_v25  ;;  %v367_v40 = vpack.c.b16 %v365_v36, %v365_v36  ;;  %v368_v41 = vpack.c.b16 %v366_v37, %v366_v37 }
  0xd7   : > { %482 = vmatpush.bf16.msra.mxu1 %v787_v26 }
  0xda   : > { %470 = vmatpush.bf16.msra.mxu0 %v778_v27 }
  0xdb   : > { %483 = vmatpush.bf16.msra.mxu1 %v786_v28 }
  0xde   : > { %471 = vmatpush.bf16.msra.mxu0 %v777_v29 }
  0xdf   : > { %484 = vmatpush.bf16.msra.mxu1 %v785_v30 }
  0xe2   : > { %472 = vmatpush.bf16.msra.mxu0 %v776_v31 }
  0xe3   : > { %485 = vmatpush.bf16.msra.mxu1 %v784_v32 }
  0xe6   : > { %473 = vmatpush.bf16.msra.mxu0 %v775_v33 }
  0xe7   : > { %486 = vmatpush.bf16.msra.mxu1 %v783_v34 }
  0xea   : > { %474 = vmatpush.bf16.msra.mxu0 %v774_v38 }
  0xeb   : > { %487 = vmatpush.bf16.msra.mxu1 %v782_v39 }
  0xed   : > { %475 = vmatmul.bf16.vlgmr.msra.gmra.mxu0 %v367_v40 }
  0xee   : > { %488 = vmatmul.bf16.vlgmr.msra.gmra.mxu1 %v368_v41 }
 0x142   : > { %v508_v46 = vpop.permute.xlu0 %507 }
 0x143   : > { %vm509_vm4 = vcmp.eq.s32.totalorder %v504_v45, %v508_v46 }
 0x144   : > { %v769_v51 = vsel %vm509_vm4, 1.0, %v1070_v50 }
 0x145   : > { %v513_v54 = vmul.f32 0.35, %v769_v51 }
 0x16a   : > { %v476_v48 = vpop.f32.mrf.mxu0 }
 0x16b   : > { %v489_v49 = vpop.f32.mrf.mxu1 }
 0x16c   : > { %v490_v52 = vadd.f32 %v489_v49, %v476_v48 }
 0x16e   : > { %v497_v53 = vmul.f32 %v901_v47, %v490_v52 }
 0x170   : > { %v767_v55 = vclamps-f32 %v497_v53, 1.0 }
 0x172   : > { %v514_v56 = vsub.f32 %v767_v55, %v513_v54  ;;  %v478_v57 = vpop.f32.mrf.mxu0 }
 0x173   : > { %v491_v58 = vpop.f32.mrf.mxu1 }
 0x174   : > { %v515_v59 = vmul.f32 10.0, %v514_v56 }
 0x176   : > { %v541_v60 = vsel %vm512_vm5, %v515_v59, 0.0  ;;  %v516_v61 = vsel %vm512_vm5, %v515_v59, -1e+30  ;;  %v547_v62 = vmul.f32 %v769_v51, %v515_v59 }
 0x177   : > { %542 = vadd.xlane.f32.xlu2 %v541_v60  ;;  %518 = vmax.xlane.f32.xlu0 %v516_v61 }
 0x17f   : > { %548 = vadd.xlane.f32.xlu2 %v547_v62 }
 0x1ea   : > { %v543_v1 = vpop.xlane.xlu2 %542  ;;  %v519_v2 = vpop.xlane.xlu0 %518 }
 0x1eb   : > { %v544_v3 = vadd.f32 %v543_v1, %v540_v63  ;;  %v520_v4 = vmax.f32 %v517_v0, %v519_v2 }
 0x1ed   : > { %545 = vst.msk [vmem:[#allocation5] sm:$0xff] %vm537_vm6, %v544_v3  ;;  %v521_v5 = vsub.f32 %v517_v0, %v520_v4  ;;  %528 = vperm.xlu1 %900, %v520_v4  }
 0x1ee   : > { %539 = vst.msk [vmem:[#allocation3] sm:$0xff] %vm537_vm6, %v520_v4 }
 0x1ef   : > { %v522_v13 = vmul.f32 1.442695, %v521_v5 }
 0x1f2   : > { %v549_v7 = vpop.xlane.xlu2 %548 }
 0x1f3   : > { %v550_v8 = vadd.f32 %v549_v7, %v546_v6 }
 0x1f5   : > { %551 = vst.msk [vmem:[#allocation6] sm:$0xff] %vm537_vm6, %v550_v8 }
 0x25f   : > { %v529_v9 = vpop.permute.xlu1 %528 }
 0x260   : > { %v531_v10 = vsub.f32 %v516_v61, %v529_v9 }
 0x262   : > { %v532_v11 = vmul.f32 1.442695, %v531_v10 }
 0x264   : > { %902 = vpow2.f32 %v532_v11 }
 0x265   : > { %904 = vpow2.f32 %v522_v13 }
 0x26a   : > { %v903_v12 = vpop.eup %902 }
 0x26b   : > { %534 = vadd.xlane.f32.xlu1 %v903_v12  ;;  %v905_v14 = vpop.eup %904 }
 0x26c   : > { %v525_v16 = vmul.f32 %v905_v14, %v524_v15 }
 0x2dd   : > { %555 = sbr.rel (%p770_p9) target bundleno = 761 (0x2f9), region = 52 }
 0x2de   : > { %v535_v17 = vpop.xlane.xlu1 %534 }
 0x2df   : > { %v536_v18 = vadd.f32 %v535_v17, %v525_v16 }
 0x2e1   : > { %538 = vst.msk [vmem:[#allocation4] sm:$0xff] %vm537_vm6, %v536_v18 }
 0x2e2   : > { %v561_v20 = vld [vmem:[#allocation6] sm:$0xff]  ;;  %v556_v22 = vld [vmem:[#allocation3] sm:$0xff]  ;;  %v564_v23 = vld [vmem:[#allocation5] sm:$0xff] }
 0x2e3   : > { %v562_v25 = vmul.f32 0.9, %v561_v20  ;;  %v565_v27 = vmul.f32 0.0005, %v564_v23 }
 0x2e8   : > { %v557_v19 = vld [vmem:[#allocation4] sm:$0xff] }
 0x2e9   : > { %906 = vlog2.f32 %v557_v19 }
 0x2ef   : > { %v907_v21 = vpop.eup %906 }
 0x2f0   : > { %v559_v24 = vmul.f32 0.6931472, %v907_v21 }
 0x2f2   : > { %v560_v26 = vadd.f32 %v559_v24, %v556_v22 }
 0x2f4   : > { %v563_v28 = vsub.f32 %v560_v26, %v562_v25 }
 0x2f6   : > { %v566_v29 = vsub.f32 %v563_v28, %v565_v27 }
 0x2f8   : > { %567 = vst.msk [vmem:[%s1264_s27] sm:$0xff] %vm537_vm6, %v566_v29 }
 0x2f9 PF: > { %s20_s25 = sadd.s32 1, %s1062_s25   ;;  %s1353_s21 = sld [smem:[#allocation13_spill]] }
 0x2fa   : > { %p17_p10 = scmp.ge.s32.totalorder %s20_s25, 6   ;;  %s1354_s20 = sld [smem:[#allocation17_spill]] }
 0x2fb   : > { %s1355_s22 = sld [smem:[#allocation14_spill]]  ;;  %s1358_s15 = smov %s1026_s16 }
 0x2fc   : > { %s1356_s8 = sld [smem:[#allocation15_spill]]  ;;  %s1359_s16 = smov %s1030_s17 }
 0x2fd   : > { %s1357_s24 = sld [smem:[#allocation16_spill]]  ;;  %s1360_s17 = smov %s1186_s10 }
 0x2fe   : > { %s1361_s18 = smov %s1038_s19  ;;  %19 = sbr.rel (!%p17_p10) target bundleno = 11 (0xb), region = 103 }
 0x2ff   : > { %s1362_s19 = smov %s1353_s21  ;;  %s1363_s21 = smov %s1054_s23 }
 0x302   : > { %s1364_s23 = smov %s1356_s8 }
 0x303   :  { %587 = vsyncpa [#allocation8], 1 }
 0x304   :  { %589 = vsyncpa [#allocation8 + $0x1], 1 }
 0x305   :  { %590 = vsyncpa [#allocation10], 1 }
 0x306   :  { %592 = vsyncpa [#allocation10 + $0x1], 1 }

</bundles_post_ra>
